<compile_context>
chip_gen: v5e
topology: v5e:2x2
jax: 0.10.0
libtpu: 0.0.40
codegen_flags: <defaults>
</compile_context>

<pallas_src>
import functools

import jax
import jax.numpy as jnp
from jax.experimental import pallas as pl
from jax.experimental.pallas import tpu as pltpu


def _gap_kernel(x_ref, o_ref, acc_ref, *, hw, hw_tile, needs_mask):
    """x_ref: (row_tile, hw_tile) block; accumulate row sums over the spatial axis."""
    k = pl.program_id(1)

    @pl.when(k == 0)
    def _():
        acc_ref[...] = jnp.zeros_like(acc_ref)

    x = x_ref[...].astype(jnp.float32)
    if needs_mask:
        # Ragged last spatial block: zero out lanes past the true H*W extent
        # so garbage columns never enter the row sums (VPU cmp+select, free
        # under the HBM-bound roofline).
        col = k * hw_tile + jax.lax.broadcasted_iota(jnp.int32, x.shape, 1)
        x = jnp.where(col < hw, x, jnp.float32(0.0))

    acc_ref[...] += jnp.sum(x, axis=-1, keepdims=True)

    @pl.when(k == pl.num_programs(1) - 1)
    def _():
        o_ref[...] = (acc_ref[...] * jnp.float32(1.0 / hw)).astype(o_ref.dtype)


def _choose_tiles(rows, hw, dtype_bytes):
    """Pick (row_tile, hw_tile) so an input block is ~4 MiB and layout-legal."""
    # Sublane packing per dtype: f32 -> 8, bf16 -> 16, int8/fp8 -> 32.
    sub = 8 if dtype_bytes >= 4 else (16 if dtype_bytes == 2 else 32)
    target = 4 * 1024 * 1024  # bytes per input block (double-buffered by Pallas)

    # Row tile: as many rows as fit the budget with the full spatial extent,
    # never exceeding the row count (ragged last block handled by cdiv grid).
    if rows <= sub:
        row_tile = rows  # block dim == full array dim is always legal
    else:
        cand = target // max(1, hw * dtype_bytes)
        cand = (cand // sub) * sub
        row_tile = max(sub, min(cand, (rows // sub) * sub, 2048))

    # Spatial tile: full H*W if the block fits the budget, otherwise a
    # 128-lane-aligned slice (adds a reduction grid axis + accumulator).
    if row_tile * hw * dtype_bytes <= 2 * target:
        hw_tile = hw
    else:
        hw_tile = (target // max(1, row_tile * dtype_bytes) // 128) * 128
        hw_tile = max(128, hw_tile)
        if hw_tile >= hw:
            hw_tile = hw

    return row_tile, hw_tile


def global_avg_pool_2d(x, block_rows=None, block_cols=None):
    """x: (N, C, H, W) -> (N, C), mean over H*W (matches .view(N,C,-1).mean(2))."""
    n, c, h, w = x.shape
    hw = h * w
    rows = n * c
    x2 = x.reshape(rows, hw)

    dtype_bytes = jnp.dtype(x.dtype).itemsize
    row_tile, hw_tile = _choose_tiles(rows, hw, dtype_bytes)
    if block_rows is not None:
        row_tile = block_rows
    if block_cols is not None:
        hw_tile = block_cols

    n_i = pl.cdiv(rows, row_tile)      # ragged last row block is fine (per-row reduce)
    n_k = pl.cdiv(hw, hw_tile)         # ragged last spatial block is masked in-kernel
    needs_mask = (hw % hw_tile) != 0

    kernel = functools.partial(
        _gap_kernel, hw=hw, hw_tile=hw_tile, needs_mask=needs_mask
    )

    out = pl.pallas_call(
        kernel,
        out_shape=jax.ShapeDtypeStruct((rows, 1), x.dtype),
        grid_spec=pltpu.PrefetchScalarGridSpec(
            num_scalar_prefetch=0,
            grid=(n_i, n_k),
            in_specs=[pl.BlockSpec((row_tile, hw_tile), lambda i, k: (i, k))],
            out_specs=pl.BlockSpec((row_tile, 1), lambda i, k: (i, 0)),
            scratch_shapes=[pltpu.VMEM((row_tile, 1), jnp.float32)],
        ),
        compiler_params=pltpu.CompilerParams(
            # Rows are independent (megacore-shardable); spatial axis is the
            # reduction and must stay last / "arbitrary".
            dimension_semantics=("parallel", "arbitrary"),
            vmem_limit_bytes=32 * 1024 * 1024,
        ),
    )(x2)

    return out[:, 0].reshape(n, c)


if __name__ == "__main__":
    key = jax.random.PRNGKey(0)
    k1, k2, k3 = jax.random.split(key, 3)

    # Primary example (module-consistent small shape).
    x = jax.random.normal(key, (2, 4, 16, 16), dtype=jnp.float32)
    y = global_avg_pool_2d(x)
    jax.block_until_ready(y)
    y_ref = x.reshape(2, 4, -1).mean(axis=2)
    assert y.shape == (2, 4)
    assert jnp.allclose(y, y_ref, atol=1e-5, rtol=1e-5)

    # Ragged row count (N*C not a multiple of the sublane tile) — no input pad.
    x2 = jax.random.normal(k1, (3, 5, 8, 8), dtype=jnp.float32)
    y2 = global_avg_pool_2d(x2)
    jax.block_until_ready(y2)
    assert jnp.allclose(y2, x2.reshape(3, 5, -1).mean(axis=2), atol=1e-5, rtol=1e-5)

    # bf16 input: native bf16 HBM traffic, f32 accumulation inside the kernel.
    x3 = jax.random.normal(k2, (2, 4, 16, 16), dtype=jnp.bfloat16)
    y3 = global_avg_pool_2d(x3)
    jax.block_until_ready(y3)
    ref3 = x3.astype(jnp.float32).reshape(2, 4, -1).mean(axis=2)
    assert jnp.allclose(y3.astype(jnp.float32), ref3, atol=2e-2, rtol=2e-2)

    # Spatial-reduction grid axis with a masked ragged last block (forced tile).
    x4 = jax.random.normal(k3, (2, 4, 16, 24), dtype=jnp.float32)
    y4 = global_avg_pool_2d(x4, block_cols=256)  # hw=384 -> 2 spatial blocks, last masked
    jax.block_until_ready(y4)
    assert jnp.allclose(y4, x4.reshape(2, 4, -1).mean(axis=2), atol=1e-5, rtol=1e-5)

    print("KERNEL_OK")
</pallas_src>

<mosaic_0001>
module attributes {stable_mosaic.version = 11 : i64} {
  func.func @_gap_kernel(%arg0: i32, %arg1: i32, %arg2: memref<8x256xf32, #tpu.memory_space<vmem>>, %arg3: memref<8x1xf32, #tpu.memory_space<vmem>>, %arg4: memref<8x1xf32, #tpu.memory_space<vmem>>) attributes {dimension_semantics = [#tpu.dimension_semantics<parallel>, #tpu.dimension_semantics<arbitrary>], iteration_bounds = array<i64: 1, 1>, scalar_prefetch = 0 : i64, scratch_operands = 1 : i64, tpu.core_type = #tpu.core_type<tc>, window_params = [{transform_indices = @transform_0, window_bounds = array<i64: 8, 256>}, {transform_indices = @transform_1, window_bounds = array<i64: 8, 1>}]} {
    %c0_i32 = arith.constant 0 : i32
    %0 = arith.cmpi eq, %arg1, %c0_i32 : i32
    %1 = arith.extui %0 : i1 to i32
    %c0_i32_0 = arith.constant 0 : i32
    %2 = arith.cmpi ne, %1, %c0_i32_0 : i32
    scf.if %2 {
      %cst_8 = arith.constant 0.000000e+00 : f32
      %12 = vector.broadcast %cst_8 : f32 to vector<8x1xf32>
      %c0_9 = arith.constant 0 : index
      %c0_10 = arith.constant 0 : index
      %13 = vector.load %arg4[%c0_9, %c0_10] : memref<8x1xf32, #tpu.memory_space<vmem>>, vector<8x1xf32>
      tpu.vector_store %arg4[%c0_9, %c0_10], %12 {strides = array<i32>} : memref<8x1xf32, #tpu.memory_space<vmem>>, vector<8x1xf32>,
    } else {
    }
    %c0 = arith.constant 0 : index
    %c0_1 = arith.constant 0 : index
    %3 = vector.load %arg2[%c0, %c0_1] : memref<8x256xf32, #tpu.memory_space<vmem>>, vector<8x256xf32>
    %c0_2 = arith.constant 0 : index
    %c0_3 = arith.constant 0 : index
    %4 = vector.load %arg4[%c0_2, %c0_3] : memref<8x1xf32, #tpu.memory_space<vmem>>, vector<8x1xf32>
    %cst = arith.constant dense<0.000000e+00> : vector<8xf32>
    %5 = vector.multi_reduction <add>, %3, %cst [1] : vector<8x256xf32> to vector<8xf32>
    %6 = vector.shape_cast %5 : vector<8xf32> to vector<8x1xf32>
    %7 = arith.addf %4, %6 : vector<8x1xf32>
    %c0_4 = arith.constant 0 : index
    %c0_5 = arith.constant 0 : index
    %8 = vector.load %arg4[%c0_4, %c0_5] : memref<8x1xf32, #tpu.memory_space<vmem>>, vector<8x1xf32>
    tpu.vector_store %arg4[%c0_4, %c0_5], %7 {strides = array<i32>} : memref<8x1xf32, #tpu.memory_space<vmem>>, vector<8x1xf32>,
    %c0_i32_6 = arith.constant 0 : i32
    %9 = arith.cmpi eq, %arg1, %c0_i32_6 : i32
    %10 = arith.extui %9 : i1 to i32
    %c0_i32_7 = arith.constant 0 : i32
    %11 = arith.cmpi ne, %10, %c0_i32_7 : i32
    scf.if %11 {
      %c0_8 = arith.constant 0 : index
      %c0_9 = arith.constant 0 : index
      %12 = vector.load %arg4[%c0_8, %c0_9] : memref<8x1xf32, #tpu.memory_space<vmem>>, vector<8x1xf32>
      %cst_10 = arith.constant 3.906250e-03 : f32
      %13 = vector.broadcast %cst_10 : f32 to vector<8x1xf32>
      %14 = arith.mulf %12, %13 : vector<8x1xf32>
      %c0_11 = arith.constant 0 : index
      %c0_12 = arith.constant 0 : index
      %15 = vector.load %arg3[%c0_11, %c0_12] : memref<8x1xf32, #tpu.memory_space<vmem>>, vector<8x1xf32>
      tpu.vector_store %arg3[%c0_11, %c0_12], %14 {strides = array<i32>} : memref<8x1xf32, #tpu.memory_space<vmem>>, vector<8x1xf32>,
    } else {
    }
    return
  }
  func.func @transform_0(%arg0: i32, %arg1: i32) -> (i32, i32) {
    %c0_i32 = arith.constant 0 : i32
    return %arg0, %arg1 : i32, i32
  }
  func.func @transform_1(%arg0: i32, %arg1: i32) -> (i32, i32) {
    %c0_i32 = arith.constant 0 : i32
    %c0_i32_0 = arith.constant 0 : i32
    return %arg0, %c0_i32 : i32, i32
  }
}

</mosaic_0001>

<bundles_post_ra>
// kernel: tpu_custom_call.1
= control target key start
LH: loop header
LB: loop body
LE: loop exit
PB: predicated region body
PF: predicated region fallthrough
CT: control target
= control target key end

     0   :  { %6 = vsyncpa [#allocation4], 0  ;;  %s76_s9 = smov [#allocation3]   ;;  %s94_s0 = inlined_call_operand.hbm [shape: f32[8,256], index: 0, kind: input, shape index: {}]   ;;  %s95_s1 = inlined_call_operand.vmem [shape: f32[8,1], index: 1, kind: output, shape index: {}]  }
   0x1   :  { %s12_s8 = sshll.u32 %s94_s0, 4  ;;  %s14_s10 = sshll.u32 %s76_s9, 4  ;;  %s13_s8 = int_to_ptr.hbm [resolvable:$true] %s12_s8  ;;  %s15_s10 = int_to_ptr.vmem [resolvable:$true] %s14_s10 }
   0x2   :  { %17 = dma.hbm_to_vmem [thread:$0]  %s13_s8, 256, %s15_s10, [#allocation4]  }
   0x3   :  { %74 = dma.done.wait [#allocation4], 256  }
   0x4   :  { %75 = vsyncadd [#allocation4], 4294967040  ;;  %vm26_vm0 = vcmask 7168   ;;  %v77_v0 = vmov 0.0   ;;  %v28_v1 = vld [vmem:[#allocation3] sm:$0xff]  ;;  %v29_v2 = vld [vmem:[#allocation3 + $0x8] sm:$0xff] }
   0x5   :  { %27 = vst.msk [vmem:[#allocation2] sm:$0xff] %vm26_vm0, %v77_v0  ;;  %v31_v3 = vadd.f32 %v29_v2, %v28_v1 }
   0x7   :  { %32 = vadd.xlane.f32.xlu0 %v31_v3 }
   0xc   :  { %v30_v4 = vld [vmem:[#allocation2] sm:$0xff] }
  0x7a   :  { %v33_v5 = vpop.xlane.xlu0 %32 }
  0x7b   :  { %v34_v6 = vadd.f32 %v33_v5, %v30_v4 }
  0x7d   :  { %36 = vst.msk [vmem:[#allocation2] sm:$0xff] %vm26_vm0, %v34_v6 }
  0x84   :  { %v40_v7 = vld [vmem:[#allocation2] sm:$0xff] }
  0x85   :  { %v41_v8 = vmul.f32 0.00390625, %v40_v7 }
  0x87   :  { %42 = vst.msk [vmem:[%s95_s1] sm:$0xff] %vm26_vm0, %v41_v8 }
  0x88   :  { %47 = vsyncpa [#allocation4], 1 }

</bundles_post_ra>
